<compile_context>
chip_gen: v5e
topology: v5e:2x2
jax: 0.10.0
libtpu: 0.0.40
codegen_flags: <defaults>
</compile_context>

<pallas_src>
import functools
import math

import jax
import jax.numpy as jnp
from jax.experimental import pallas as pl
from jax.experimental.pallas import tpu as pltpu


def _fused_lstm_kernel(xw_ref, wh_ref, out_ref):
    """Full-sequence LSTM recurrence for one weight group (two stacked streams).

    xw_ref : (1, T, 2B, 4H)  precomputed x @ W_ih^T + (b_ih + b_hh) for this group
    wh_ref : (1, H, 4H)      W_hh^T for this group (resident in VMEM)
    out_ref: (1, T, 2B, H)   hidden outputs for both streams of this group
    """
    T = xw_ref.shape[1]
    BB = xw_ref.shape[2]          # 2B stacked streams
    H = out_ref.shape[3]

    wh = wh_ref[0]                # (H, 4H) -- loaded once, reused every timestep

    def step(t, carry):
        h, c = carry              # (BB, H) float32, carried in registers
        # Recurrent matmul only; input projection was hoisted out of the loop.
        gates = xw_ref[0, t] + jnp.dot(h, wh, preferred_element_type=jnp.float32)
        # Evaluate sigmoid/tanh on the full 4H-lane slab, then take static slices
        # (2 full-width EUP ops instead of 4 quarter-lane ones).
        sig = jax.nn.sigmoid(gates)
        tnh = jnp.tanh(gates)
        i_g = sig[:, 0 * H:1 * H]
        f_g = sig[:, 1 * H:2 * H]
        g_g = tnh[:, 2 * H:3 * H]
        o_g = sig[:, 3 * H:4 * H]
        c_new = f_g * c + i_g * g_g
        h_new = o_g * jnp.tanh(c_new)
        # VMEM store into the resident output block; HBM writeback happens once
        # per grid step for the whole (T, 2B, H) slab.
        out_ref[0, t] = h_new.astype(out_ref.dtype)
        return h_new, c_new

    h0 = jnp.zeros((BB, H), jnp.float32)
    c0 = jnp.zeros((BB, H), jnp.float32)
    jax.lax.fori_loop(0, T, step, (h0, c0), unroll=True)


def _fused_lstm_run(xw, wh):
    """Run the fused recurrence.

    xw: (2, T, 2B, 4H) float32 -- precomputed input projections (incl. bias)
    wh: (2, H, 4H)     float32 -- W_hh^T per weight group
    returns (2, T, 2B, H) float32
    """
    G, T, BB, H4 = xw.shape
    H = wh.shape[1]
    return pl.pallas_call(
        _fused_lstm_kernel,
        out_shape=jax.ShapeDtypeStruct((G, T, BB, H), jnp.float32),
        grid_spec=pltpu.PrefetchScalarGridSpec(
            num_scalar_prefetch=0,
            grid=(G,),  # one grid step per weight set (re / im)
            in_specs=[
                pl.BlockSpec((1, T, BB, H4), lambda g: (g, 0, 0, 0)),
                pl.BlockSpec((1, H, H4), lambda g: (g, 0, 0)),
            ],
            out_specs=pl.BlockSpec((1, T, BB, H), lambda g: (g, 0, 0, 0)),
        ),
        compiler_params=pltpu.CompilerParams(
            # The two weight-sets' recurrences are independent -> shard across
            # TensorCores on v7x; near-zero effect (and no harm) on v5e/v6e.
            dimension_semantics=("parallel",),
        ),
    )(xw, wh)


def init_lstm_params(key, input_size, hidden_size):
    """Deterministic init matching PyTorch nn.LSTM parameter shapes.

    weight_ih_l0: (4H, I), weight_hh_l0: (4H, H), bias_ih_l0/bias_hh_l0: (4H,)
    Uniform(-1/sqrt(H), 1/sqrt(H)) like PyTorch's default reset_parameters.
    Pre-transposed / pre-summed for the kernel.
    """
    k = 1.0 / math.sqrt(hidden_size)
    k1, k2, k3, k4 = jax.random.split(key, 4)
    w_ih = jax.random.uniform(k1, (4 * hidden_size, input_size), jnp.float32, -k, k)
    w_hh = jax.random.uniform(k2, (4 * hidden_size, hidden_size), jnp.float32, -k, k)
    b_ih = jax.random.uniform(k3, (4 * hidden_size,), jnp.float32, -k, k)
    b_hh = jax.random.uniform(k4, (4 * hidden_size,), jnp.float32, -k, k)
    return {
        "wi_t": w_ih.T,                                  # (I, 4H)
        "wh_t": w_hh.T,                                  # (H, 4H)
        "b": (b_ih + b_hh).reshape(1, 4 * hidden_size),  # (1, 4H)
    }


@jax.jit
def complex_lstm_forward(x, params_re, params_im):
    """ComplexLSTM forward.

    x: (T, B, I, 2) float32, last dim = (real, imag)
    returns (T, B, H, 2) float32
    """
    T, B, I, _ = x.shape
    x_re = x[..., 0]   # (T, B, I)
    x_im = x[..., 1]   # (T, B, I)

    # Weight group 0 = re weights, applied to [x_re ; x_im] (stacked on batch).
    # Weight group 1 = im weights, applied to [x_im ; x_re].
    x_stack = jnp.stack(
        [jnp.concatenate([x_re, x_im], axis=1),
         jnp.concatenate([x_im, x_re], axis=1)],
        axis=0)                                                      # (2, T, 2B, I)

    wi = jnp.stack([params_re["wi_t"], params_im["wi_t"]], axis=0)   # (2, I, 4H)
    wh = jnp.stack([params_re["wh_t"], params_im["wh_t"]], axis=0)   # (2, H, 4H)
    b = jnp.stack([params_re["b"], params_im["b"]], axis=0)          # (2, 1, 4H)

    # Hoisted, time-independent input projection for the whole sequence:
    # one large matmul (XLA / MXU-friendly), outside the serial recurrence.
    xw = jnp.einsum("gtbi,gif->gtbf", x_stack, wi,
                    preferred_element_type=jnp.float32) + b[:, None]  # (2, T, 2B, 4H)

    h_all = _fused_lstm_run(xw, wh)                                  # (2, T, 2B, H)

    rr = h_all[0, :, :B]   # lstm_re(x_re)
    ir = h_all[0, :, B:]   # lstm_re(x_im)
    ii = h_all[1, :, :B]   # lstm_im(x_im)
    ri = h_all[1, :, B:]   # lstm_im(x_re)

    real = rr - ii
    imaginary = ir + ri
    return jnp.stack((real, imaginary), axis=-1)                     # (T, B, H, 2)


# ----------------------- pure-JAX reference (for checking) -----------------------
def _lstm_ref(x_seq, wi_t, wh_t, b):
    T, B, I = x_seq.shape
    H = wh_t.shape[0]

    def step(carry, x_t):
        h, c = carry
        gates = x_t @ wi_t + h @ wh_t + b
        i = jax.nn.sigmoid(gates[:, 0 * H:1 * H])
        f = jax.nn.sigmoid(gates[:, 1 * H:2 * H])
        g = jnp.tanh(gates[:, 2 * H:3 * H])
        o = jax.nn.sigmoid(gates[:, 3 * H:4 * H])
        c = f * c + i * g
        h = o * jnp.tanh(c)
        return (h, c), h

    init = (jnp.zeros((B, H), jnp.float32), jnp.zeros((B, H), jnp.float32))
    _, ys = jax.lax.scan(step, init, x_seq)
    return ys


def complex_lstm_ref(x, pre, pim):
    x_re, x_im = x[..., 0], x[..., 1]
    rr = _lstm_ref(x_re, pre["wi_t"], pre["wh_t"], pre["b"])
    ii = _lstm_ref(x_im, pim["wi_t"], pim["wh_t"], pim["b"])
    ir = _lstm_ref(x_im, pre["wi_t"], pre["wh_t"], pre["b"])
    ri = _lstm_ref(x_re, pim["wi_t"], pim["wh_t"], pim["b"])
    return jnp.stack((rr - ii, ir + ri), axis=-1)


if __name__ == "__main__":
    # Small shapes consistent with the module: seq=8, batch=2, input=16, hidden=32.
    T, B, I, H = 8, 2, 16, 32

    root = jax.random.PRNGKey(0)
    kx, kre, kim = jax.random.split(root, 3)

    x = jax.random.normal(kx, (T, B, I, 2), dtype=jnp.float32)
    params_re = init_lstm_params(kre, I, H)
    params_im = init_lstm_params(kim, I, H)

    out = complex_lstm_forward(x, params_re, params_im)
    out = jax.block_until_ready(out)

    assert out.shape == (T, B, H, 2), out.shape
    assert out.dtype == jnp.float32

    ref = complex_lstm_ref(x, params_re, params_im)
    err = float(jnp.max(jnp.abs(out - ref)))
    assert err < 1e-4, f"max abs err vs reference: {err}"

    print("KERNEL_OK")
</pallas_src>

<mosaic_0001>
module attributes {stable_mosaic.version = 11 : i64} {
  func.func @_fused_lstm_kernel(%arg0: i32, %arg1: memref<1x8x4x128xf32, #tpu.memory_space<vmem>>, %arg2: memref<1x32x128xf32, #tpu.memory_space<vmem>>, %arg3: memref<1x8x4x32xf32, #tpu.memory_space<vmem>>) attributes {dimension_semantics = [#tpu.dimension_semantics<parallel>], iteration_bounds = array<i64: 2>, scalar_prefetch = 0 : i64, scratch_operands = 0 : i64, tpu.core_type = #tpu.core_type<tc>, window_params = [{transform_indices = @transform_0, window_bounds = array<i64: 1, 8, 4, 128>}, {transform_indices = @transform_1, window_bounds = array<i64: 1, 32, 128>}, {transform_indices = @transform_2, window_bounds = array<i64: 1, 8, 4, 32>}]} {
    %c0 = arith.constant 0 : index
    %c0_0 = arith.constant 0 : index
    %c0_1 = arith.constant 0 : index
    %0 = vector.load %arg2[%c0, %c0_0, %c0_1] : memref<1x32x128xf32, #tpu.memory_space<vmem>>, vector<1x32x128xf32>
    %1 = vector.shape_cast %0 : vector<1x32x128xf32> to vector<32x128xf32>
    %cst = arith.constant 0.000000e+00 : f32
    %2 = vector.broadcast %cst : f32 to vector<4x32xf32>
    %cst_2 = arith.constant 0.000000e+00 : f32
    %3 = vector.broadcast %cst_2 : f32 to vector<4x32xf32>
    %c0_i32 = arith.constant 0 : i32
    %c0_3 = arith.constant 0 : index
    %4 = arith.index_cast %c0_i32 : i32 to index
    %c0_4 = arith.constant 0 : index
    %c0_5 = arith.constant 0 : index
    %5 = vector.load %arg1[%c0_3, %4, %c0_4, %c0_5] : memref<1x8x4x128xf32, #tpu.memory_space<vmem>>, vector<1x1x4x128xf32>
    %6 = vector.shape_cast %5 : vector<1x1x4x128xf32> to vector<4x128xf32>
    %cst_6 = arith.constant dense<0.000000e+00> : vector<4x128xf32>
    %7 = tpu.matmul %2, %1, %cst_6 {dimension_numbers = #tpu.dot_dimension_numbers<[1], [0], [0], [1], [0, 0, 1, 1], [], []>} : vector<4x32xf32>, vector<32x128xf32>, vector<4x128xf32> -> vector<4x128xf32>
    %8 = arith.addf %6, %7 : vector<4x128xf32>
    %9 = arith.negf %8 : vector<4x128xf32>
    %10 = math.exp %9 : vector<4x128xf32>
    %cst_7 = arith.constant 1.000000e+00 : f32
    %11 = vector.broadcast %cst_7 : f32 to vector<4x128xf32>
    %12 = arith.addf %11, %10 : vector<4x128xf32>
    %13 = arith.divf %11, %12 : vector<4x128xf32>
    %14 = math.tanh %8 : vector<4x128xf32>
    %15 = vector.extract_strided_slice %13 {offsets = [0, 0], sizes = [4, 32], strides = [1, 1]} : vector<4x128xf32> to vector<4x32xf32>
    %16 = vector.extract_strided_slice %13 {offsets = [0, 32], sizes = [4, 32], strides = [1, 1]} : vector<4x128xf32> to vector<4x32xf32>
    %17 = vector.extract_strided_slice %14 {offsets = [0, 64], sizes = [4, 32], strides = [1, 1]} : vector<4x128xf32> to vector<4x32xf32>
    %18 = vector.extract_strided_slice %13 {offsets = [0, 96], sizes = [4, 32], strides = [1, 1]} : vector<4x128xf32> to vector<4x32xf32>
    %19 = arith.mulf %16, %3 : vector<4x32xf32>
    %20 = arith.mulf %15, %17 : vector<4x32xf32>
    %21 = arith.addf %19, %20 : vector<4x32xf32>
    %22 = math.tanh %21 : vector<4x32xf32>
    %23 = arith.mulf %18, %22 : vector<4x32xf32>
    %c0_8 = arith.constant 0 : index
    %24 = arith.index_cast %c0_i32 : i32 to index
    %c0_9 = arith.constant 0 : index
    %c0_10 = arith.constant 0 : index
    %25 = vector.load %arg3[%c0_8, %24, %c0_9, %c0_10] : memref<1x8x4x32xf32, #tpu.memory_space<vmem>>, vector<1x1x4x32xf32>
    %26 = vector.shape_cast %25 : vector<1x1x4x32xf32> to vector<4x32xf32>
    %27 = vector.shape_cast %23 : vector<4x32xf32> to vector<1x1x4x32xf32>
    tpu.vector_store %arg3[%c0_8, %24, %c0_9, %c0_10], %27 {strides = array<i32>} : memref<1x8x4x32xf32, #tpu.memory_space<vmem>>, vector<1x1x4x32xf32>,
    %c1_i32 = arith.constant 1 : i32
    %c0_11 = arith.constant 0 : index
    %28 = arith.index_cast %c1_i32 : i32 to index
    %c0_12 = arith.constant 0 : index
    %c0_13 = arith.constant 0 : index
    %29 = vector.load %arg1[%c0_11, %28, %c0_12, %c0_13] : memref<1x8x4x128xf32, #tpu.memory_space<vmem>>, vector<1x1x4x128xf32>
    %30 = vector.shape_cast %29 : vector<1x1x4x128xf32> to vector<4x128xf32>
    %cst_14 = arith.constant dense<0.000000e+00> : vector<4x128xf32>
    %31 = tpu.matmul %23, %1, %cst_14 {dimension_numbers = #tpu.dot_dimension_numbers<[1], [0], [0], [1], [0, 0, 1, 1], [], []>} : vector<4x32xf32>, vector<32x128xf32>, vector<4x128xf32> -> vector<4x128xf32>
    %32 = arith.addf %30, %31 : vector<4x128xf32>
    %33 = arith.negf %32 : vector<4x128xf32>
    %34 = math.exp %33 : vector<4x128xf32>
    %cst_15 = arith.constant 1.000000e+00 : f32
    %35 = vector.broadcast %cst_15 : f32 to vector<4x128xf32>
    %36 = arith.addf %35, %34 : vector<4x128xf32>
    %37 = arith.divf %35, %36 : vector<4x128xf32>
    %38 = math.tanh %32 : vector<4x128xf32>
    %39 = vector.extract_strided_slice %37 {offsets = [0, 0], sizes = [4, 32], strides = [1, 1]} : vector<4x128xf32> to vector<4x32xf32>
    %40 = vector.extract_strided_slice %37 {offsets = [0, 32], sizes = [4, 32], strides = [1, 1]} : vector<4x128xf32> to vector<4x32xf32>
    %41 = vector.extract_strided_slice %38 {offsets = [0, 64], sizes = [4, 32], strides = [1, 1]} : vector<4x128xf32> to vector<4x32xf32>
    %42 = vector.extract_strided_slice %37 {offsets = [0, 96], sizes = [4, 32], strides = [1, 1]} : vector<4x128xf32> to vector<4x32xf32>
    %43 = arith.mulf %40, %21 : vector<4x32xf32>
    %44 = arith.mulf %39, %41 : vector<4x32xf32>
    %45 = arith.addf %43, %44 : vector<4x32xf32>
    %46 = math.tanh %45 : vector<4x32xf32>
    %47 = arith.mulf %42, %46 : vector<4x32xf32>
    %c0_16 = arith.constant 0 : index
    %48 = arith.index_cast %c1_i32 : i32 to index
    %c0_17 = arith.constant 0 : index
    %c0_18 = arith.constant 0 : index
    %49 = vector.load %arg3[%c0_16, %48, %c0_17, %c0_18] : memref<1x8x4x32xf32, #tpu.memory_space<vmem>>, vector<1x1x4x32xf32>
    %50 = vector.shape_cast %49 : vector<1x1x4x32xf32> to vector<4x32xf32>
    %51 = vector.shape_cast %47 : vector<4x32xf32> to vector<1x1x4x32xf32>
    tpu.vector_store %arg3[%c0_16, %48, %c0_17, %c0_18], %51 {strides = array<i32>} : memref<1x8x4x32xf32, #tpu.memory_space<vmem>>, vector<1x1x4x32xf32>,
    %c2_i32 = arith.constant 2 : i32
    %c0_19 = arith.constant 0 : index
    %52 = arith.index_cast %c2_i32 : i32 to index
    %c0_20 = arith.constant 0 : index
    %c0_21 = arith.constant 0 : index
    %53 = vector.load %arg1[%c0_19, %52, %c0_20, %c0_21] : memref<1x8x4x128xf32, #tpu.memory_space<vmem>>, vector<1x1x4x128xf32>
    %54 = vector.shape_cast %53 : vector<1x1x4x128xf32> to vector<4x128xf32>
    %cst_22 = arith.constant dense<0.000000e+00> : vector<4x128xf32>
    %55 = tpu.matmul %47, %1, %cst_22 {dimension_numbers = #tpu.dot_dimension_numbers<[1], [0], [0], [1], [0, 0, 1, 1], [], []>} : vector<4x32xf32>, vector<32x128xf32>, vector<4x128xf32> -> vector<4x128xf32>
    %56 = arith.addf %54, %55 : vector<4x128xf32>
    %57 = arith.negf %56 : vector<4x128xf32>
    %58 = math.exp %57 : vector<4x128xf32>
    %cst_23 = arith.constant 1.000000e+00 : f32
    %59 = vector.broadcast %cst_23 : f32 to vector<4x128xf32>
    %60 = arith.addf %59, %58 : vector<4x128xf32>
    %61 = arith.divf %59, %60 : vector<4x128xf32>
    %62 = math.tanh %56 : vector<4x128xf32>
    %63 = vector.extract_strided_slice %61 {offsets = [0, 0], sizes = [4, 32], strides = [1, 1]} : vector<4x128xf32> to vector<4x32xf32>
    %64 = vector.extract_strided_slice %61 {offsets = [0, 32], sizes = [4, 32], strides = [1, 1]} : vector<4x128xf32> to vector<4x32xf32>
    %65 = vector.extract_strided_slice %62 {offsets = [0, 64], sizes = [4, 32], strides = [1, 1]} : vector<4x128xf32> to vector<4x32xf32>
    %66 = vector.extract_strided_slice %61 {offsets = [0, 96], sizes = [4, 32], strides = [1, 1]} : vector<4x128xf32> to vector<4x32xf32>
    %67 = arith.mulf %64, %45 : vector<4x32xf32>
    %68 = arith.mulf %63, %65 : vector<4x32xf32>
    %69 = arith.addf %67, %68 : vector<4x32xf32>
    %70 = math.tanh %69 : vector<4x32xf32>
    %71 = arith.mulf %66, %70 : vector<4x32xf32>
    %c0_24 = arith.constant 0 : index
    %72 = arith.index_cast %c2_i32 : i32 to index
    %c0_25 = arith.constant 0 : index
    %c0_26 = arith.constant 0 : index
    %73 = vector.load %arg3[%c0_24, %72, %c0_25, %c0_26] : memref<1x8x4x32xf32, #tpu.memory_space<vmem>>, vector<1x1x4x32xf32>
    %74 = vector.shape_cast %73 : vector<1x1x4x32xf32> to vector<4x32xf32>
    %75 = vector.shape_cast %71 : vector<4x32xf32> to vector<1x1x4x32xf32>
    tpu.vector_store %arg3[%c0_24, %72, %c0_25, %c0_26], %75 {strides = array<i32>} : memref<1x8x4x32xf32, #tpu.memory_space<vmem>>, vector<1x1x4x32xf32>,
    %c3_i32 = arith.constant 3 : i32
    %c0_27 = arith.constant 0 : index
    %76 = arith.index_cast %c3_i32 : i32 to index
    %c0_28 = arith.constant 0 : index
    %c0_29 = arith.constant 0 : index
    %77 = vector.load %arg1[%c0_27, %76, %c0_28, %c0_29] : memref<1x8x4x128xf32, #tpu.memory_space<vmem>>, vector<1x1x4x128xf32>
    %78 = vector.shape_cast %77 : vector<1x1x4x128xf32> to vector<4x128xf32>
    %cst_30 = arith.constant dense<0.000000e+00> : vector<4x128xf32>
    %79 = tpu.matmul %71, %1, %cst_30 {dimension_numbers = #tpu.dot_dimension_numbers<[1], [0], [0], [1], [0, 0, 1, 1], [], []>} : vector<4x32xf32>, vector<32x128xf32>, vector<4x128xf32> -> vector<4x128xf32>
    %80 = arith.addf %78, %79 : vector<4x128xf32>
    %81 = arith.negf %80 : vector<4x128xf32>
    %82 = math.exp %81 : vector<4x128xf32>
    %cst_31 = arith.constant 1.000000e+00 : f32
    %83 = vector.broadcast %cst_31 : f32 to vector<4x128xf32>
    %84 = arith.addf %83, %82 : vector<4x128xf32>
    %85 = arith.divf %83, %84 : vector<4x128xf32>
    %86 = math.tanh %80 : vector<4x128xf32>
    %87 = vector.extract_strided_slice %85 {offsets = [0, 0], sizes = [4, 32], strides = [1, 1]} : vector<4x128xf32> to vector<4x32xf32>
    %88 = vector.extract_strided_slice %85 {offsets = [0, 32], sizes = [4, 32], strides = [1, 1]} : vector<4x128xf32> to vector<4x32xf32>
    %89 = vector.extract_strided_slice %86 {offsets = [0, 64], sizes = [4, 32], strides = [1, 1]} : vector<4x128xf32> to vector<4x32xf32>
    %90 = vector.extract_strided_slice %85 {offsets = [0, 96], sizes = [4, 32], strides = [1, 1]} : vector<4x128xf32> to vector<4x32xf32>
    %91 = arith.mulf %88, %69 : vector<4x32xf32>
    %92 = arith.mulf %87, %89 : vector<4x32xf32>
    %93 = arith.addf %91, %92 : vector<4x32xf32>
    %94 = math.tanh %93 : vector<4x32xf32>
    %95 = arith.mulf %90, %94 : vector<4x32xf32>
    %c0_32 = arith.constant 0 : index
    %96 = arith.index_cast %c3_i32 : i32 to index
    %c0_33 = arith.constant 0 : index
    %c0_34 = arith.constant 0 : index
    %97 = vector.load %arg3[%c0_32, %96, %c0_33, %c0_34] : memref<1x8x4x32xf32, #tpu.memory_space<vmem>>, vector<1x1x4x32xf32>
    %98 = vector.shape_cast %97 : vector<1x1x4x32xf32> to vector<4x32xf32>
    %99 = vector.shape_cast %95 : vector<4x32xf32> to vector<1x1x4x32xf32>
    tpu.vector_store %arg3[%c0_32, %96, %c0_33, %c0_34], %99 {strides = array<i32>} : memref<1x8x4x32xf32, #tpu.memory_space<vmem>>, vector<1x1x4x32xf32>,
    %c4_i32 = arith.constant 4 : i32
    %c0_35 = arith.constant 0 : index
    %100 = arith.index_cast %c4_i32 : i32 to index
    %c0_36 = arith.constant 0 : index
    %c0_37 = arith.constant 0 : index
    %101 = vector.load %arg1[%c0_35, %100, %c0_36, %c0_37] : memref<1x8x4x128xf32, #tpu.memory_space<vmem>>, vector<1x1x4x128xf32>
    %102 = vector.shape_cast %101 : vector<1x1x4x128xf32> to vector<4x128xf32>
    %cst_38 = arith.constant dense<0.000000e+00> : vector<4x128xf32>
    %103 = tpu.matmul %95, %1, %cst_38 {dimension_numbers = #tpu.dot_dimension_numbers<[1], [0], [0], [1], [0, 0, 1, 1], [], []>} : vector<4x32xf32>, vector<32x128xf32>, vector<4x128xf32> -> vector<4x128xf32>
    %104 = arith.addf %102, %103 : vector<4x128xf32>
    %105 = arith.negf %104 : vector<4x128xf32>
    %106 = math.exp %105 : vector<4x128xf32>
    %cst_39 = arith.constant 1.000000e+00 : f32
    %107 = vector.broadcast %cst_39 : f32 to vector<4x128xf32>
    %108 = arith.addf %107, %106 : vector<4x128xf32>
    %109 = arith.divf %107, %108 : vector<4x128xf32>
    %110 = math.tanh %104 : vector<4x128xf32>
    %111 = vector.extract_strided_slice %109 {offsets = [0, 0], sizes = [4, 32], strides = [1, 1]} : vector<4x128xf32> to vector<4x32xf32>
    %112 = vector.extract_strided_slice %109 {offsets = [0, 32], sizes = [4, 32], strides = [1, 1]} : vector<4x128xf32> to vector<4x32xf32>
    %113 = vector.extract_strided_slice %110 {offsets = [0, 64], sizes = [4, 32], strides = [1, 1]} : vector<4x128xf32> to vector<4x32xf32>
    %114 = vector.extract_strided_slice %109 {offsets = [0, 96], sizes = [4, 32], strides = [1, 1]} : vector<4x128xf32> to vector<4x32xf32>
    %115 = arith.mulf %112, %93 : vector<4x32xf32>
    %116 = arith.mulf %111, %113 : vector<4x32xf32>
    %117 = arith.addf %115, %116 : vector<4x32xf32>
    %118 = math.tanh %117 : vector<4x32xf32>
    %119 = arith.mulf %114, %118 : vector<4x32xf32>
    %c0_40 = arith.constant 0 : index
    %120 = arith.index_cast %c4_i32 : i32 to index
    %c0_41 = arith.constant 0 : index
    %c0_42 = arith.constant 0 : index
    %121 = vector.load %arg3[%c0_40, %120, %c0_41, %c0_42] : memref<1x8x4x32xf32, #tpu.memory_space<vmem>>, vector<1x1x4x32xf32>
    %122 = vector.shape_cast %121 : vector<1x1x4x32xf32> to vector<4x32xf32>
    %123 = vector.shape_cast %119 : vector<4x32xf32> to vector<1x1x4x32xf32>
    tpu.vector_store %arg3[%c0_40, %120, %c0_41, %c0_42], %123 {strides = array<i32>} : memref<1x8x4x32xf32, #tpu.memory_space<vmem>>, vector<1x1x4x32xf32>,
    %c5_i32 = arith.constant 5 : i32
    %c0_43 = arith.constant 0 : index
    %124 = arith.index_cast %c5_i32 : i32 to index
    %c0_44 = arith.constant 0 : index
    %c0_45 = arith.constant 0 : index
    %125 = vector.load %arg1[%c0_43, %124, %c0_44, %c0_45] : memref<1x8x4x128xf32, #tpu.memory_space<vmem>>, vector<1x1x4x128xf32>
    %126 = vector.shape_cast %125 : vector<1x1x4x128xf32> to vector<4x128xf32>
    %cst_46 = arith.constant dense<0.000000e+00> : vector<4x128xf32>
    %127 = tpu.matmul %119, %1, %cst_46 {dimension_numbers = #tpu.dot_dimension_numbers<[1], [0], [0], [1], [0, 0, 1, 1], [], []>} : vector<4x32xf32>, vector<32x128xf32>, vector<4x128xf32> -> vector<4x128xf32>
    %128 = arith.addf %126, %127 : vector<4x128xf32>
    %129 = arith.negf %128 : vector<4x128xf32>
    %130 = math.exp %129 : vector<4x128xf32>
    %cst_47 = arith.constant 1.000000e+00 : f32
    %131 = vector.broadcast %cst_47 : f32 to vector<4x128xf32>
    %132 = arith.addf %131, %130 : vector<4x128xf32>
    %133 = arith.divf %131, %132 : vector<4x128xf32>
    %134 = math.tanh %128 : vector<4x128xf32>
    %135 = vector.extract_strided_slice %133 {offsets = [0, 0], sizes = [4, 32], strides = [1, 1]} : vector<4x128xf32> to vector<4x32xf32>
    %136 = vector.extract_strided_slice %133 {offsets = [0, 32], sizes = [4, 32], strides = [1, 1]} : vector<4x128xf32> to vector<4x32xf32>
    %137 = vector.extract_strided_slice %134 {offsets = [0, 64], sizes = [4, 32], strides = [1, 1]} : vector<4x128xf32> to vector<4x32xf32>
    %138 = vector.extract_strided_slice %133 {offsets = [0, 96], sizes = [4, 32], strides = [1, 1]} : vector<4x128xf32> to vector<4x32xf32>
    %139 = arith.mulf %136, %117 : vector<4x32xf32>
    %140 = arith.mulf %135, %137 : vector<4x32xf32>
    %141 = arith.addf %139, %140 : vector<4x32xf32>
    %142 = math.tanh %141 : vector<4x32xf32>
    %143 = arith.mulf %138, %142 : vector<4x32xf32>
    %c0_48 = arith.constant 0 : index
    %144 = arith.index_cast %c5_i32 : i32 to index
    %c0_49 = arith.constant 0 : index
    %c0_50 = arith.constant 0 : index
    %145 = vector.load %arg3[%c0_48, %144, %c0_49, %c0_50] : memref<1x8x4x32xf32, #tpu.memory_space<vmem>>, vector<1x1x4x32xf32>
    %146 = vector.shape_cast %145 : vector<1x1x4x32xf32> to vector<4x32xf32>
    %147 = vector.shape_cast %143 : vector<4x32xf32> to vector<1x1x4x32xf32>
    tpu.vector_store %arg3[%c0_48, %144, %c0_49, %c0_50], %147 {strides = array<i32>} : memref<1x8x4x32xf32, #tpu.memory_space<vmem>>, vector<1x1x4x32xf32>,
    %c6_i32 = arith.constant 6 : i32
    %c0_51 = arith.constant 0 : index
    %148 = arith.index_cast %c6_i32 : i32 to index
    %c0_52 = arith.constant 0 : index
    %c0_53 = arith.constant 0 : index
    %149 = vector.load %arg1[%c0_51, %148, %c0_52, %c0_53] : memref<1x8x4x128xf32, #tpu.memory_space<vmem>>, vector<1x1x4x128xf32>
    %150 = vector.shape_cast %149 : vector<1x1x4x128xf32> to vector<4x128xf32>
    %cst_54 = arith.constant dense<0.000000e+00> : vector<4x128xf32>
    %151 = tpu.matmul %143, %1, %cst_54 {dimension_numbers = #tpu.dot_dimension_numbers<[1], [0], [0], [1], [0, 0, 1, 1], [], []>} : vector<4x32xf32>, vector<32x128xf32>, vector<4x128xf32> -> vector<4x128xf32>
    %152 = arith.addf %150, %151 : vector<4x128xf32>
    %153 = arith.negf %152 : vector<4x128xf32>
    %154 = math.exp %153 : vector<4x128xf32>
    %cst_55 = arith.constant 1.000000e+00 : f32
    %155 = vector.broadcast %cst_55 : f32 to vector<4x128xf32>
    %156 = arith.addf %155, %154 : vector<4x128xf32>
    %157 = arith.divf %155, %156 : vector<4x128xf32>
    %158 = math.tanh %152 : vector<4x128xf32>
    %159 = vector.extract_strided_slice %157 {offsets = [0, 0], sizes = [4, 32], strides = [1, 1]} : vector<4x128xf32> to vector<4x32xf32>
    %160 = vector.extract_strided_slice %157 {offsets = [0, 32], sizes = [4, 32], strides = [1, 1]} : vector<4x128xf32> to vector<4x32xf32>
    %161 = vector.extract_strided_slice %158 {offsets = [0, 64], sizes = [4, 32], strides = [1, 1]} : vector<4x128xf32> to vector<4x32xf32>
    %162 = vector.extract_strided_slice %157 {offsets = [0, 96], sizes = [4, 32], strides = [1, 1]} : vector<4x128xf32> to vector<4x32xf32>
    %163 = arith.mulf %160, %141 : vector<4x32xf32>
    %164 = arith.mulf %159, %161 : vector<4x32xf32>
    %165 = arith.addf %163, %164 : vector<4x32xf32>
    %166 = math.tanh %165 : vector<4x32xf32>
    %167 = arith.mulf %162, %166 : vector<4x32xf32>
    %c0_56 = arith.constant 0 : index
    %168 = arith.index_cast %c6_i32 : i32 to index
    %c0_57 = arith.constant 0 : index
    %c0_58 = arith.constant 0 : index
    %169 = vector.load %arg3[%c0_56, %168, %c0_57, %c0_58] : memref<1x8x4x32xf32, #tpu.memory_space<vmem>>, vector<1x1x4x32xf32>
    %170 = vector.shape_cast %169 : vector<1x1x4x32xf32> to vector<4x32xf32>
    %171 = vector.shape_cast %167 : vector<4x32xf32> to vector<1x1x4x32xf32>
    tpu.vector_store %arg3[%c0_56, %168, %c0_57, %c0_58], %171 {strides = array<i32>} : memref<1x8x4x32xf32, #tpu.memory_space<vmem>>, vector<1x1x4x32xf32>,
    %c7_i32 = arith.constant 7 : i32
    %c0_59 = arith.constant 0 : index
    %172 = arith.index_cast %c7_i32 : i32 to index
    %c0_60 = arith.constant 0 : index
    %c0_61 = arith.constant 0 : index
    %173 = vector.load %arg1[%c0_59, %172, %c0_60, %c0_61] : memref<1x8x4x128xf32, #tpu.memory_space<vmem>>, vector<1x1x4x128xf32>
    %174 = vector.shape_cast %173 : vector<1x1x4x128xf32> to vector<4x128xf32>
    %cst_62 = arith.constant dense<0.000000e+00> : vector<4x128xf32>
    %175 = tpu.matmul %167, %1, %cst_62 {dimension_numbers = #tpu.dot_dimension_numbers<[1], [0], [0], [1], [0, 0, 1, 1], [], []>} : vector<4x32xf32>, vector<32x128xf32>, vector<4x128xf32> -> vector<4x128xf32>
    %176 = arith.addf %174, %175 : vector<4x128xf32>
    %177 = arith.negf %176 : vector<4x128xf32>
    %178 = math.exp %177 : vector<4x128xf32>
    %cst_63 = arith.constant 1.000000e+00 : f32
    %179 = vector.broadcast %cst_63 : f32 to vector<4x128xf32>
    %180 = arith.addf %179, %178 : vector<4x128xf32>
    %181 = arith.divf %179, %180 : vector<4x128xf32>
    %182 = math.tanh %176 : vector<4x128xf32>
    %183 = vector.extract_strided_slice %181 {offsets = [0, 0], sizes = [4, 32], strides = [1, 1]} : vector<4x128xf32> to vector<4x32xf32>
    %184 = vector.extract_strided_slice %181 {offsets = [0, 32], sizes = [4, 32], strides = [1, 1]} : vector<4x128xf32> to vector<4x32xf32>
    %185 = vector.extract_strided_slice %182 {offsets = [0, 64], sizes = [4, 32], strides = [1, 1]} : vector<4x128xf32> to vector<4x32xf32>
    %186 = vector.extract_strided_slice %181 {offsets = [0, 96], sizes = [4, 32], strides = [1, 1]} : vector<4x128xf32> to vector<4x32xf32>
    %187 = arith.mulf %184, %165 : vector<4x32xf32>
    %188 = arith.mulf %183, %185 : vector<4x32xf32>
    %189 = arith.addf %187, %188 : vector<4x32xf32>
    %190 = math.tanh %189 : vector<4x32xf32>
    %191 = arith.mulf %186, %190 : vector<4x32xf32>
    %c0_64 = arith.constant 0 : index
    %192 = arith.index_cast %c7_i32 : i32 to index
    %c0_65 = arith.constant 0 : index
    %c0_66 = arith.constant 0 : index
    %193 = vector.load %arg3[%c0_64, %192, %c0_65, %c0_66] : memref<1x8x4x32xf32, #tpu.memory_space<vmem>>, vector<1x1x4x32xf32>
    %194 = vector.shape_cast %193 : vector<1x1x4x32xf32> to vector<4x32xf32>
    %195 = vector.shape_cast %191 : vector<4x32xf32> to vector<1x1x4x32xf32>
    tpu.vector_store %arg3[%c0_64, %192, %c0_65, %c0_66], %195 {strides = array<i32>} : memref<1x8x4x32xf32, #tpu.memory_space<vmem>>, vector<1x1x4x32xf32>,
    %c8_i32 = arith.constant 8 : i32
    return
  }
  func.func @transform_0(%arg0: i32) -> (i32, i32, i32, i32) {
    %c0_i32 = arith.constant 0 : i32
    %c0_i32_0 = arith.constant 0 : i32
    %c0_i32_1 = arith.constant 0 : i32
    %c0_i32_2 = arith.constant 0 : i32
    return %arg0, %c0_i32, %c0_i32_0, %c0_i32_1 : i32, i32, i32, i32
  }
  func.func @transform_1(%arg0: i32) -> (i32, i32, i32) {
    %c0_i32 = arith.constant 0 : i32
    %c0_i32_0 = arith.constant 0 : i32
    %c0_i32_1 = arith.constant 0 : i32
    return %arg0, %c0_i32, %c0_i32_0 : i32, i32, i32
  }
  func.func @transform_2(%arg0: i32) -> (i32, i32, i32, i32) {
    %c0_i32 = arith.constant 0 : i32
    %c0_i32_0 = arith.constant 0 : i32
    %c0_i32_1 = arith.constant 0 : i32
    %c0_i32_2 = arith.constant 0 : i32
    return %arg0, %c0_i32, %c0_i32_0, %c0_i32_1 : i32, i32, i32, i32
  }
}

</mosaic_0001>

<bundles_post_ra>
// kernel: complex_lstm_forward.1
= control target key start
LH: loop header
LB: loop body
LE: loop exit
PB: predicated region body
PF: predicated region fallthrough
CT: control target
= control target key end

     0   :  { %s926_s9 = smov 0   ;;  %s1018_s0 = inlined_call_operand.vmem [shape: f32[2,8,4,128], index: 0, kind: input, shape index: {}]   ;;  %s1019_s1 = inlined_call_operand.vmem [shape: f32[2,32,128], index: 1, kind: input, shape index: {}]   ;;  %s1020_s2 = inlined_call_operand.vmem [shape: f32[2,8,4,32], index: 2, kind: output, shape index: {}]  }
   0x1 LB: > { %s780_s10 = sadd.s32 4294967295, %s906_s9   ;;  %p784_p0 = scmp.ge.s32.totalorder %s906_s9, 1  ;;  %s906_s9 = sphi %s926_s9, %s12_s9  }
   0x2   : > { %p122_p1 = scmp.lt.s32.totalorder %s906_s9, 3 }
   0x4   : > { %p123_p2 = pnand %p784_p0, %p122_p1 }
   0x5   : > { %p149_p3 = scmp.lt.s32.totalorder (!%p123_p2), %s780_s10, 1  ;;  %s909_s18 = smov (!%p123_p2), 64  }
   0x6   : > { %126 = sbr.rel (%p123_p2) target bundleno = 4671 (0x123f), region = 28  ;;  %s910_s19 = smov (!%p123_p2), 32  }
   0xb   : > { %s1022_s10 = smov (!%p149_p3, %s780_s10), 1  ;;  %v908_v4 = vmov 0.0   ;;  %vm235_vm4 = vcmask 257024   ;;  %vm169_vm5 = vcmask 261120  }
   0xc   : > { %s934_s11 = sshll.u32 %s1022_s10, 5 }
   0xd   : > { %s158_s14 = scalar_lea.vmem %s1019_s1, %s934_s11  ;;  %s944_s17 = scalar_lea.vmem %s1018_s0, %s934_s11 }
   0xe   : > { %v167_v0 = vld [vmem:[%s158_s14 + $0x18] sm:$0xff]  ;;  %v166_v1 = vld [vmem:[%s158_s14 + $0x10] sm:$0xff]  ;;  %v165_v2 = vld [vmem:[%s158_s14 + $0x8] sm:$0xff]  ;;  %s955_s22 = scalar_lea.vmem %s1020_s2, %s934_s11 }
   0xf   : > { %185 = vmatpush.msra.mxu0 %v167_v0  ;;  %253 = vmatpush.msra.mxu1 %v167_v0  ;;  %v164_v3 = vld [vmem:[%s158_s14] sm:$0xff]  ;;  %v796_v57 = vld [vmem:[%s944_s17 + $0x8] sm:$0xf] }
  0x10   : > { %321 = vmatpush.msra.mxu2 %v167_v0  ;;  %389 = vmatpush.msra.mxu3 %v167_v0  ;;  %v168_v5 = vld [vmem:[%s944_s17] sm:$0xf]  ;;  %v792_v31 = vld [vmem:[%s944_s17 + $0x4] sm:$0xf] }
  0x11   : > { %186 = vmatpush.msra.mxu0 %v166_v1  ;;  %254 = vmatpush.msra.mxu1 %v166_v1 }
  0x12   : > { %322 = vmatpush.msra.mxu2 %v166_v1  ;;  %390 = vmatpush.msra.mxu3 %v166_v1 }
  0x13   : > { %187 = vmatpush.msra.mxu0 %v165_v2  ;;  %255 = vmatpush.msra.mxu1 %v165_v2 }
  0x14   : > { %323 = vmatpush.msra.mxu2 %v165_v2  ;;  %391 = vmatpush.msra.mxu3 %v165_v2 }
  0x15   : > { %188 = vmatpush.msra.mxu0 %v164_v3  ;;  %256 = vmatpush.msra.mxu1 %v164_v3 }
  0x16   : > { %189 = vmatmul.f32.vlgmr.msra.gmra.mxu0 %v908_v4  ;;  %324 = vmatpush.msra.mxu2 %v164_v3 }
  0x17   : > { %392 = vmatpush.msra.mxu3 %v164_v3  ;;  %457 = vmatpush.msrb.mxu0 %v167_v0 }
  0x18   : > { %525 = vmatpush.msrb.mxu1 %v167_v0  ;;  %593 = vmatpush.msrb.mxu2 %v167_v0 }
  0x19   : > { %458 = vmatpush.msrb.mxu0 %v166_v1  ;;  %661 = vmatpush.msrb.mxu3 %v167_v0 }
  0x1a   : > { %526 = vmatpush.msrb.mxu1 %v166_v1  ;;  %594 = vmatpush.msrb.mxu2 %v166_v1 }
  0x1b   : > { %459 = vmatpush.msrb.mxu0 %v165_v2  ;;  %662 = vmatpush.msrb.mxu3 %v166_v1 }
  0x1c   : > { %527 = vmatpush.msrb.mxu1 %v165_v2  ;;  %595 = vmatpush.msrb.mxu2 %v165_v2 }
  0x1d   : > { %460 = vmatpush.msrb.mxu0 %v164_v3  ;;  %663 = vmatpush.msrb.mxu3 %v165_v2 }
  0x1e   : > { %528 = vmatpush.msrb.mxu1 %v164_v3  ;;  %596 = vmatpush.msrb.mxu2 %v164_v3 }
  0x1f   : > { %664 = vmatpush.msrb.mxu3 %v164_v3 }
  0x93   : > { %v190_v6 = vpop.f32.mrf.mxu0 }
  0x94   : > { %v193_v7 = vadd.f32 %v190_v6, %v168_v5 }
  0x96   : > { %836 = vtanh.f32 %v193_v7  ;;  %v791_v9 = vmul.f32 -1.442695, %v193_v7 }
  0x98   : > { %838 = vpow2.f32 %v791_v9 }
  0x9c   : > { %v837_v8 = vpop.eup %836 }
  0x9d   : > { %216 = vrot.lane.b32.xlu0 %v837_v8, %s909_s18 }
  0x9e   : > { %v839_v10 = vpop.eup %838 }
  0x9f   : > { %v197_v11 = vadd.f32 1.0, %v839_v10 }
  0xa1   : > { %840 = vrcp.f32 %v197_v11  ;;  %v209_v17 = vand.u32 2147483648, %v197_v11  ;;  %vm203_vm1 = vweird.f32 %v197_v11  ;;  %v207_v18 = vand.u32 2147483647, %v197_v11 }
  0xa3   : > { %v210_v20 = vor.u32 1.1754944e-38, %v209_v17  ;;  %vm208_vm3 = vcmp.eq.f32.partialorder %v207_v18, 8.507059e+37 }
  0xa7   : > { %v841_v12 = vpop.eup %840 }
  0xa8   : > { %v199_v13 = vmul.f32 %v841_v12, %v197_v11  ;;  %vm204_vm0 = vweird.f32 %v841_v12 }
  0xa9   : > { %vm205_vm2 = vmor %vm203_vm1, %vm204_vm0 }
  0xaa   : > { %v200_v14 = vsub.f32 1.0, %v199_v13 }
  0xac   : > { %v201_v15 = vmul.f32 %v841_v12, %v200_v14 }
  0xae   : > { %v202_v16 = vadd.f32 %v841_v12, %v201_v15 }
  0xb0   : > { %v206_v19 = vsel %vm205_vm2, %v841_v12, %v202_v16 }
  0xb1   : > { %v211_v22 = vsel %vm208_vm3, %v210_v20, %v206_v19  ;;  %v800_v19 = vld [vmem:[%s944_s17 + $0xc] sm:$0xf] }
  0xb2   : > { %v214_v24 = vmul.f32 0.0, %v211_v22 }
 0x10f   : > { %v217_v21 = vpop.permute.xlu0 %216 }
 0x110   : > { %v219_v23 = vmul.f32 %v217_v21, %v211_v22 }
 0x112   : > { %221 = vrot.lane.b32.xlu0 %v219_v23, %s910_s19 }
 0x184   : > { %v222_v25 = vpop.permute.xlu0 %221 }
 0x185   : > { %v224_v26 = vadd.f32 %v222_v25, %v214_v24 }
 0x187   : > { %842 = vtanh.f32 %v224_v26 }
 0x18d   : > { %v843_v27 = vpop.eup %842 }
 0x18e   : > { %227 = vrot.lane.b32.xlu1 %v843_v27, %s909_s18 }
 0x200   : > { %v228_v28 = vpop.permute.xlu1 %227 }
 0x201   : > { %v230_v29 = vmul.f32 %v228_v28, %v211_v22 }
 0x203   : > { %232 = vrot.lane.b32.xlu1 %v230_v29, %s910_s19 }
 0x275   : > { %v233_v30 = vpop.permute.xlu1 %232 }
 0x276   : > { %236 = vst.msk [vmem:[%s955_s22] sm:$0xf] %vm235_vm4, %v233_v30  ;;  %793 = vmatmul.msk.f32.vlgmr.msra.gmra.mxu1 %vm169_vm5, %v233_v30 }
 0x2f3   : > { %v258_v32 = vpop.f32.mrf.mxu1 }
 0x2f4   : > { %v261_v33 = vadd.f32 %v792_v31, %v258_v32 }
 0x2f6   : > { %844 = vtanh.f32 %v261_v33  ;;  %v794_v35 = vmul.f32 -1.442695, %v261_v33 }
 0x2f8   : > { %846 = vpow2.f32 %v794_v35 }
 0x2fc   : > { %v845_v34 = vpop.eup %844 }
 0x2fd   : > { %284 = vrot.lane.b32.xlu2 %v845_v34, %s909_s18 }
 0x2fe   : > { %v847_v36 = vpop.eup %846 }
 0x2ff   : > { %v265_v37 = vadd.f32 1.0, %v847_v36 }
 0x301   : > { %848 = vrcp.f32 %v265_v37  ;;  %v277_v43 = vand.u32 2147483648, %v265_v37  ;;  %vm271_vm7 = vweird.f32 %v265_v37  ;;  %v275_v44 = vand.u32 2147483647, %v265_v37 }
 0x303   : > { %v278_v46 = vor.u32 1.1754944e-38, %v277_v43  ;;  %vm276_vm9 = vcmp.eq.f32.partialorder %v275_v44, 8.507059e+37 }
 0x307   : > { %v849_v38 = vpop.eup %848 }
 0x308   : > { %v267_v39 = vmul.f32 %v849_v38, %v265_v37  ;;  %vm272_vm6 = vweird.f32 %v849_v38 }
 0x309   : > { %vm273_vm8 = vmor %vm271_vm7, %vm272_vm6 }
 0x30a   : > { %v268_v40 = vsub.f32 1.0, %v267_v39 }
 0x30c   : > { %v269_v41 = vmul.f32 %v849_v38, %v268_v40 }
 0x30e   : > { %v270_v42 = vadd.f32 %v849_v38, %v269_v41 }
 0x310   : > { %v274_v45 = vsel %vm273_vm8, %v849_v38, %v270_v42 }
 0x311   : > { %v279_v48 = vsel %vm276_vm9, %v278_v46, %v274_v45  ;;  %v804_v45 = vld [vmem:[%s944_s17 + $0x10] sm:$0xf] }
 0x312   : > { %v282_v50 = vmul.f32 %v279_v48, %v224_v26 }
 0x357   : > { %v285_v47 = vpop.permute.xlu2 %284 }
 0x358   : > { %v287_v49 = vmul.f32 %v285_v47, %v279_v48 }
 0x35a   : > { %289 = vrot.lane.b32.xlu2 %v287_v49, %s910_s19 }
 0x3b4   : > { %v290_v51 = vpop.permute.xlu2 %289 }
 0x3b5   : > { %v292_v52 = vadd.f32 %v290_v51, %v282_v50 }
 0x3b7   : > { %850 = vtanh.f32 %v292_v52 }
 0x3bd   : > { %v851_v53 = vpop.eup %850 }
 0x3be   : > { %295 = vrot.lane.b32.xlu0 %v851_v53, %s909_s18 }
 0x430   : > { %v296_v54 = vpop.permute.xlu0 %295 }
 0x431   : > { %v298_v55 = vmul.f32 %v296_v54, %v279_v48 }
 0x433   : > { %300 = vrot.lane.b32.xlu1 %v298_v55, %s910_s19 }
 0x4a5   : > { %v301_v56 = vpop.permute.xlu1 %300 }
 0x4a6   : > { %795 = vst.msk [vmem:[%s955_s22 + $0x4] sm:$0xf] %vm235_vm4, %v301_v56  ;;  %797 = vmatmul.msk.f32.vlgmr.msra.gmra.mxu2 %vm169_vm5, %v301_v56 }
 0x529   : > { %v326_v58 = vpop.f32.mrf.mxu2 }
 0x52a   : > { %v329_v59 = vadd.f32 %v796_v57, %v326_v58 }
 0x52c   : > { %852 = vtanh.f32 %v329_v59  ;;  %v798_v61 = vmul.f32 -1.442695, %v329_v59 }
 0x52e   : > { %854 = vpow2.f32 %v798_v61 }
 0x532   : > { %v853_v60 = vpop.eup %852 }
 0x533   : > { %352 = vrot.lane.b32.xlu2 %v853_v60, %s909_s18 }
 0x534   : > { %v855_v62 = vpop.eup %854 }
 0x535   : > { %v333_v63 = vadd.f32 1.0, %v855_v62 }
 0x537   : > { %856 = vrcp.f32 %v333_v63  ;;  %v345_v5 = vand.u32 2147483648, %v333_v63  ;;  %vm339_vm11 = vweird.f32 %v333_v63  ;;  %v343_v6 = vand.u32 2147483647, %v333_v63 }
 0x539   : > { %v346_v8 = vor.u32 1.1754944e-38, %v345_v5  ;;  %vm344_vm13 = vcmp.eq.f32.partialorder %v343_v6, 8.507059e+37 }
 0x53d   : > { %v857_v0 = vpop.eup %856 }
 0x53e   : > { %v335_v1 = vmul.f32 %v857_v0, %v333_v63  ;;  %vm340_vm10 = vweird.f32 %v857_v0 }
 0x53f   : > { %vm341_vm12 = vmor %vm339_vm11, %vm340_vm10 }
 0x540   : > { %v336_v2 = vsub.f32 1.0, %v335_v1 }
 0x542   : > { %v337_v3 = vmul.f32 %v857_v0, %v336_v2 }
 0x544   : > { %v338_v4 = vadd.f32 %v857_v0, %v337_v3 }
 0x546   : > { %v342_v7 = vsel %vm341_vm12, %v857_v0, %v338_v4 }
 0x547   : > { %v347_v10 = vsel %vm344_vm13, %v346_v8, %v342_v7  ;;  %v808_v7 = vld [vmem:[%s944_s17 + $0x14] sm:$0xf] }
 0x548   : > { %v350_v12 = vmul.f32 %v347_v10, %v292_v52 }
 0x58d   : > { %v353_v9 = vpop.permute.xlu2 %352 }
 0x58e   : > { %v355_v11 = vmul.f32 %v353_v9, %v347_v10 }
 0x590   : > { %357 = vrot.lane.b32.xlu0 %v355_v11, %s910_s19 }
 0x602   : > { %v358_v13 = vpop.permute.xlu0 %357 }
 0x603   : > { %v360_v14 = vadd.f32 %v358_v13, %v350_v12 }
 0x605   : > { %858 = vtanh.f32 %v360_v14 }
 0x60b   : > { %v859_v15 = vpop.eup %858 }
 0x60c   : > { %363 = vrot.lane.b32.xlu1 %v859_v15, %s909_s18 }
 0x67e   : > { %v364_v16 = vpop.permute.xlu1 %363 }
 0x67f   : > { %v366_v17 = vmul.f32 %v364_v16, %v347_v10 }
 0x681   : > { %368 = vrot.lane.b32.xlu2 %v366_v17, %s910_s19 }
 0x6db   : > { %v369_v18 = vpop.permute.xlu2 %368 }
 0x6dc   : > { %799 = vst.msk [vmem:[%s955_s22 + $0x8] sm:$0xf] %vm235_vm4, %v369_v18  ;;  %801 = vmatmul.msk.f32.vlgmr.msra.gmra.mxu3 %vm169_vm5, %v369_v18 }
 0x75f   : > { %v394_v20 = vpop.f32.mrf.mxu3 }
 0x760   : > { %v397_v21 = vadd.f32 %v800_v19, %v394_v20 }
 0x762   : > { %860 = vtanh.f32 %v397_v21  ;;  %v802_v23 = vmul.f32 -1.442695, %v397_v21 }
 0x764   : > { %862 = vpow2.f32 %v802_v23 }
 0x768   : > { %v861_v22 = vpop.eup %860 }
 0x769   : > { %420 = vrot.lane.b32.xlu0 %v861_v22, %s909_s18 }
 0x76a   : > { %v863_v24 = vpop.eup %862 }
 0x76b   : > { %v401_v25 = vadd.f32 1.0, %v863_v24 }
 0x76d   : > { %864 = vrcp.f32 %v401_v25  ;;  %v413_v31 = vand.u32 2147483648, %v401_v25  ;;  %vm407_vm15 = vweird.f32 %v401_v25  ;;  %v411_v32 = vand.u32 2147483647, %v401_v25 }
 0x76f   : > { %v414_v34 = vor.u32 1.1754944e-38, %v413_v31  ;;  %vm412_vm1 = vcmp.eq.f32.partialorder %v411_v32, 8.507059e+37 }
 0x773   : > { %v865_v26 = vpop.eup %864 }
 0x774   : > { %v403_v27 = vmul.f32 %v865_v26, %v401_v25  ;;  %vm408_vm14 = vweird.f32 %v865_v26 }
 0x775   : > { %vm409_vm0 = vmor %vm407_vm15, %vm408_vm14 }
 0x776   : > { %v404_v28 = vsub.f32 1.0, %v403_v27 }
 0x778   : > { %v405_v29 = vmul.f32 %v865_v26, %v404_v28 }
 0x77a   : > { %v406_v30 = vadd.f32 %v865_v26, %v405_v29 }
 0x77c   : > { %v410_v33 = vsel %vm409_vm0, %v865_v26, %v406_v30 }
 0x77d   : > { %v415_v36 = vsel %vm412_vm1, %v414_v34, %v410_v33  ;;  %v812_v33 = vld [vmem:[%s944_s17 + $0x18] sm:$0xf] }
 0x77e   : > { %v418_v38 = vmul.f32 %v415_v36, %v360_v14 }
 0x7db   : > { %v421_v35 = vpop.permute.xlu0 %420 }
 0x7dc   : > { %v423_v37 = vmul.f32 %v421_v35, %v415_v36 }
 0x7de   : > { %425 = vrot.lane.b32.xlu1 %v423_v37, %s910_s19 }
 0x850   : > { %v426_v39 = vpop.permute.xlu1 %425 }
 0x851   : > { %v428_v40 = vadd.f32 %v426_v39, %v418_v38 }
 0x853   : > { %866 = vtanh.f32 %v428_v40 }
 0x859   : > { %v867_v41 = vpop.eup %866 }
 0x85a   : > { %431 = vrot.lane.b32.xlu2 %v867_v41, %s909_s18 }
 0x8b4   : > { %v432_v42 = vpop.permute.xlu2 %431 }
 0x8b5   : > { %v434_v43 = vmul.f32 %v432_v42, %v415_v36 }
 0x8b7   : > { %436 = vrot.lane.b32.xlu0 %v434_v43, %s910_s19 }
 0x929   : > { %v437_v44 = vpop.permute.xlu0 %436 }
 0x92a   : > { %803 = vst.msk [vmem:[%s955_s22 + $0xc] sm:$0xf] %vm235_vm4, %v437_v44  ;;  %805 = vmatmul.msk.f32.vlgmr.msrb.gmra.mxu0 %vm169_vm5, %v437_v44 }
 0x9a7   : > { %v462_v46 = vpop.f32.mrf.mxu0 }
 0x9a8   : > { %v465_v47 = vadd.f32 %v804_v45, %v462_v46 }
 0x9aa   : > { %868 = vtanh.f32 %v465_v47  ;;  %v806_v49 = vmul.f32 -1.442695, %v465_v47 }
 0x9ac   : > { %870 = vpow2.f32 %v806_v49 }
 0x9b0   : > { %v869_v48 = vpop.eup %868 }
 0x9b1   : > { %488 = vrot.lane.b32.xlu1 %v869_v48, %s909_s18 }
 0x9b2   : > { %v871_v50 = vpop.eup %870 }
 0x9b3   : > { %v469_v51 = vadd.f32 1.0, %v871_v50 }
 0x9b5   : > { %872 = vrcp.f32 %v469_v51  ;;  %v481_v57 = vand.u32 2147483648, %v469_v51  ;;  %vm475_vm3 = vweird.f32 %v469_v51  ;;  %v479_v58 = vand.u32 2147483647, %v469_v51 }
 0x9b7   : > { %v482_v60 = vor.u32 1.1754944e-38, %v481_v57  ;;  %vm480_vm7 = vcmp.eq.f32.partialorder %v479_v58, 8.507059e+37 }
 0x9bb   : > { %v873_v52 = vpop.eup %872 }
 0x9bc   : > { %v471_v53 = vmul.f32 %v873_v52, %v469_v51  ;;  %vm476_vm2 = vweird.f32 %v873_v52 }
 0x9bd   : > { %vm477_vm6 = vmor %vm475_vm3, %vm476_vm2 }
 0x9be   : > { %v472_v54 = vsub.f32 1.0, %v471_v53 }
 0x9c0   : > { %v473_v55 = vmul.f32 %v873_v52, %v472_v54 }
 0x9c2   : > { %v474_v56 = vadd.f32 %v873_v52, %v473_v55 }
 0x9c4   : > { %v478_v59 = vsel %vm477_vm6, %v873_v52, %v474_v56 }
 0x9c5   : > { %v483_v62 = vsel %vm480_vm7, %v482_v60, %v478_v59  ;;  %v816_v59 = vld [vmem:[%s944_s17 + $0x1c] sm:$0xf] }
 0x9c6   : > { %v486_v0 = vmul.f32 %v483_v62, %v428_v40 }
 0xa23   : > { %v489_v61 = vpop.permute.xlu1 %488 }
 0xa24   : > { %v491_v63 = vmul.f32 %v489_v61, %v483_v62 }
 0xa26   : > { %493 = vrot.lane.b32.xlu2 %v491_v63, %s910_s19 }
 0xa80   : > { %v494_v1 = vpop.permute.xlu2 %493 }
 0xa81   : > { %v496_v2 = vadd.f32 %v494_v1, %v486_v0 }
 0xa83   : > { %874 = vtanh.f32 %v496_v2 }
 0xa89   : > { %v875_v3 = vpop.eup %874 }
 0xa8a   : > { %499 = vrot.lane.b32.xlu0 %v875_v3, %s909_s18 }
 0xafc   : > { %v500_v4 = vpop.permute.xlu0 %499 }
 0xafd   : > { %v502_v5 = vmul.f32 %v500_v4, %v483_v62 }
 0xaff   : > { %504 = vrot.lane.b32.xlu1 %v502_v5, %s910_s19 }
 0xb71   : > { %v505_v6 = vpop.permute.xlu1 %504 }
 0xb72   : > { %807 = vst.msk [vmem:[%s955_s22 + $0x10] sm:$0xf] %vm235_vm4, %v505_v6  ;;  %809 = vmatmul.msk.f32.vlgmr.msrb.gmra.mxu1 %vm169_vm5, %v505_v6 }
 0xbef   : > { %v530_v8 = vpop.f32.mrf.mxu1 }
 0xbf0   : > { %v533_v9 = vadd.f32 %v808_v7, %v530_v8 }
 0xbf2   : > { %876 = vtanh.f32 %v533_v9  ;;  %v810_v11 = vmul.f32 -1.442695, %v533_v9 }
 0xbf4   : > { %878 = vpow2.f32 %v810_v11 }
 0xbf8   : > { %v877_v10 = vpop.eup %876 }
 0xbf9   : > { %556 = vrot.lane.b32.xlu2 %v877_v10, %s909_s18 }
 0xbfa   : > { %v879_v12 = vpop.eup %878 }
 0xbfb   : > { %v537_v13 = vadd.f32 1.0, %v879_v12 }
 0xbfd   : > { %880 = vrcp.f32 %v537_v13  ;;  %v549_v19 = vand.u32 2147483648, %v537_v13  ;;  %vm543_vm9 = vweird.f32 %v537_v13  ;;  %v547_v20 = vand.u32 2147483647, %v537_v13 }
 0xbff   : > { %v550_v22 = vor.u32 1.1754944e-38, %v549_v19  ;;  %vm548_vm11 = vcmp.eq.f32.partialorder %v547_v20, 8.507059e+37 }
 0xc03   : > { %v881_v14 = vpop.eup %880 }
 0xc04   : > { %v539_v15 = vmul.f32 %v881_v14, %v537_v13  ;;  %vm544_vm8 = vweird.f32 %v881_v14 }
 0xc05   : > { %vm545_vm10 = vmor %vm543_vm9, %vm544_vm8 }
 0xc06   : > { %v540_v16 = vsub.f32 1.0, %v539_v15 }
 0xc08   : > { %v541_v17 = vmul.f32 %v881_v14, %v540_v16 }
 0xc0a   : > { %v542_v18 = vadd.f32 %v881_v14, %v541_v17 }
 0xc0c   : > { %v546_v21 = vsel %vm545_vm10, %v881_v14, %v542_v18 }
 0xc0d   : > { %v551_v24 = vsel %vm548_vm11, %v550_v22, %v546_v21 }
 0xc0e   : > { %v554_v26 = vmul.f32 %v551_v24, %v496_v2 }
 0xc53   : > { %v557_v23 = vpop.permute.xlu2 %556 }
 0xc54   : > { %v559_v25 = vmul.f32 %v557_v23, %v551_v24 }
 0xc56   : > { %561 = vrot.lane.b32.xlu0 %v559_v25, %s910_s19 }
 0xcc8   : > { %v562_v27 = vpop.permute.xlu0 %561 }
 0xcc9   : > { %v564_v28 = vadd.f32 %v562_v27, %v554_v26 }
 0xccb   : > { %882 = vtanh.f32 %v564_v28 }
 0xcd1   : > { %v883_v29 = vpop.eup %882 }
 0xcd2   : > { %567 = vrot.lane.b32.xlu1 %v883_v29, %s909_s18 }
 0xd44   : > { %v568_v30 = vpop.permute.xlu1 %567 }
 0xd45   : > { %v570_v31 = vmul.f32 %v568_v30, %v551_v24 }
 0xd47   : > { %572 = vrot.lane.b32.xlu2 %v570_v31, %s910_s19 }
 0xda1   : > { %v573_v32 = vpop.permute.xlu2 %572 }
 0xda2   : > { %811 = vst.msk [vmem:[%s955_s22 + $0x14] sm:$0xf] %vm235_vm4, %v573_v32  ;;  %813 = vmatmul.msk.f32.vlgmr.msrb.gmra.mxu2 %vm169_vm5, %v573_v32 }
 0xe25   : > { %v598_v34 = vpop.f32.mrf.mxu2 }
 0xe26   : > { %v601_v35 = vadd.f32 %v812_v33, %v598_v34 }
 0xe28   : > { %884 = vtanh.f32 %v601_v35  ;;  %v814_v37 = vmul.f32 -1.442695, %v601_v35 }
 0xe2a   : > { %886 = vpow2.f32 %v814_v37 }
 0xe2e   : > { %v885_v36 = vpop.eup %884 }
 0xe2f   : > { %624 = vrot.lane.b32.xlu0 %v885_v36, %s909_s18 }
 0xe30   : > { %v887_v38 = vpop.eup %886 }
 0xe31   : > { %v605_v39 = vadd.f32 1.0, %v887_v38 }
 0xe33   : > { %888 = vrcp.f32 %v605_v39  ;;  %v617_v45 = vand.u32 2147483648, %v605_v39  ;;  %vm611_vm13 = vweird.f32 %v605_v39  ;;  %v615_v46 = vand.u32 2147483647, %v605_v39 }
 0xe35   : > { %v618_v48 = vor.u32 1.1754944e-38, %v617_v45  ;;  %vm616_vm15 = vcmp.eq.f32.partialorder %v615_v46, 8.507059e+37 }
 0xe39   : > { %v889_v40 = vpop.eup %888 }
 0xe3a   : > { %v607_v41 = vmul.f32 %v889_v40, %v605_v39  ;;  %vm612_vm12 = vweird.f32 %v889_v40 }
 0xe3b   : > { %vm613_vm14 = vmor %vm611_vm13, %vm612_vm12 }
 0xe3c   : > { %v608_v42 = vsub.f32 1.0, %v607_v41 }
 0xe3e   : > { %v609_v43 = vmul.f32 %v889_v40, %v608_v42 }
 0xe40   : > { %v610_v44 = vadd.f32 %v889_v40, %v609_v43 }
 0xe42   : > { %v614_v47 = vsel %vm613_vm14, %v889_v40, %v610_v44 }
 0xe43   : > { %v619_v50 = vsel %vm616_vm15, %v618_v48, %v614_v47 }
 0xe44   : > { %v622_v52 = vmul.f32 %v619_v50, %v564_v28 }
 0xea1   : > { %v625_v49 = vpop.permute.xlu0 %624 }
 0xea2   : > { %v627_v51 = vmul.f32 %v625_v49, %v619_v50 }
 0xea4   : > { %629 = vrot.lane.b32.xlu1 %v627_v51, %s910_s19 }
 0xf16   : > { %v630_v53 = vpop.permute.xlu1 %629 }
 0xf17   : > { %v632_v54 = vadd.f32 %v630_v53, %v622_v52 }
 0xf19   : > { %890 = vtanh.f32 %v632_v54 }
 0xf1f   : > { %v891_v55 = vpop.eup %890 }
 0xf20   : > { %635 = vrot.lane.b32.xlu2 %v891_v55, %s909_s18 }
 0xf7a   : > { %v636_v56 = vpop.permute.xlu2 %635 }
 0xf7b   : > { %v638_v57 = vmul.f32 %v636_v56, %v619_v50 }
 0xf7d   : > { %640 = vrot.lane.b32.xlu0 %v638_v57, %s910_s19 }
 0xfef   : > { %v641_v58 = vpop.permute.xlu0 %640 }
 0xff0   : > { %815 = vst.msk [vmem:[%s955_s22 + $0x18] sm:$0xf] %vm235_vm4, %v641_v58  ;;  %817 = vmatmul.msk.f32.vlgmr.msrb.gmra.mxu3 %vm169_vm5, %v641_v58 }
0x1073   : > { %v666_v60 = vpop.f32.mrf.mxu3 }
0x1074   : > { %v669_v61 = vadd.f32 %v816_v59, %v666_v60 }
0x1076   : > { %892 = vtanh.f32 %v669_v61  ;;  %v818_v63 = vmul.f32 -1.442695, %v669_v61 }
0x1078   : > { %894 = vpow2.f32 %v818_v63 }
0x107c   : > { %v893_v62 = vpop.eup %892 }
0x107d   : > { %692 = vrot.lane.b32.xlu1 %v893_v62, %s909_s18 }
0x107e   : > { %v895_v0 = vpop.eup %894 }
0x107f   : > { %v673_v1 = vadd.f32 1.0, %v895_v0 }
0x1081   : > { %896 = vrcp.f32 %v673_v1  ;;  %v685_v7 = vand.u32 2147483648, %v673_v1  ;;  %vm679_vm5 = vweird.f32 %v673_v1  ;;  %v683_v8 = vand.u32 2147483647, %v673_v1 }
0x1083   : > { %v686_v10 = vor.u32 1.1754944e-38, %v685_v7  ;;  %vm684_vm2 = vcmp.eq.f32.partialorder %v683_v8, 8.507059e+37 }
0x1087   : > { %v897_v2 = vpop.eup %896 }
0x1088   : > { %v675_v3 = vmul.f32 %v897_v2, %v673_v1  ;;  %vm680_vm0 = vweird.f32 %v897_v2 }
0x1089   : > { %vm681_vm1 = vmor %vm679_vm5, %vm680_vm0 }
0x108a   : > { %v676_v4 = vsub.f32 1.0, %v675_v3 }
0x108c   : > { %v677_v5 = vmul.f32 %v897_v2, %v676_v4 }
0x108e   : > { %v678_v6 = vadd.f32 %v897_v2, %v677_v5 }
0x1090   : > { %v682_v9 = vsel %vm681_vm1, %v897_v2, %v678_v6 }
0x1091   : > { %v687_v12 = vsel %vm684_vm2, %v686_v10, %v682_v9 }
0x1092   : > { %v690_v14 = vmul.f32 %v687_v12, %v632_v54 }
0x10ef   : > { %v693_v11 = vpop.permute.xlu1 %692 }
0x10f0   : > { %v695_v13 = vmul.f32 %v693_v11, %v687_v12 }
0x10f2   : > { %697 = vrot.lane.b32.xlu2 %v695_v13, %s910_s19 }
0x114c   : > { %v698_v15 = vpop.permute.xlu2 %697 }
0x114d   : > { %v700_v16 = vadd.f32 %v698_v15, %v690_v14 }
0x114f   : > { %898 = vtanh.f32 %v700_v16 }
0x1155   : > { %v899_v17 = vpop.eup %898 }
0x1156   : > { %703 = vrot.lane.b32.xlu0 %v899_v17, %s909_s18 }
0x11c8   : > { %v704_v18 = vpop.permute.xlu0 %703 }
0x11c9   : > { %v706_v19 = vmul.f32 %v704_v18, %v687_v12 }
0x11cb   : > { %708 = vrot.lane.b32.xlu1 %v706_v19, %s910_s19 }
0x123d   : > { %v709_v20 = vpop.permute.xlu1 %708 }
0x123e   : > { %819 = vst.msk [vmem:[%s955_s22 + $0x1c] sm:$0xf] %vm235_vm4, %v709_v20 }
0x123f PF: > { %s12_s9 = sadd.s32 1, %s906_s9  }
0x1240   : > { %p9_p4 = scmp.ge.s32.totalorder %s12_s9, 4  }
0x1242   :  { %11 = sbr.rel (!%p9_p4) target bundleno = 1 (0x1), region = 75 }

</bundles_post_ra>
